<compile_context>
chip_gen: v6e
topology: v6e:2x2x1
jax: 0.10.0
libtpu: 0.0.40
codegen_flags: <defaults>
</compile_context>

<pallas_src>
import functools
import numpy as np
import jax
import jax.numpy as jnp
from jax import lax
from jax.experimental import pallas as pl
from jax.experimental.pallas import tpu as pltpu


def _round_up(n, m):
    return ((n + m - 1) // m) * m


def _tile_dim(n, pref):
    """Return (tile, padded_n).

    If n <= pref the tile is the full (unpadded) dim, which always satisfies
    the (8,128) block constraint. Otherwise tile = pref (a multiple of both 8
    and 128) and n is padded up to a multiple of it.
    """
    if n <= pref:
        return n, n
    return pref, _round_up(n, pref)


def _pick_q_tile(batch, seq, pref):
    """Pick the q tile so batch * q_blocks >= 2 (keeps both v7x TCs busy)."""
    tq, sp = _tile_dim(seq, pref)
    if batch * (sp // tq) < 2 and seq >= 16:
        tq = _round_up((seq + 1) // 2, 8)
        sp = _round_up(seq, tq)
    return tq, sp


def _vmem_limit(footprint_bytes):
    """Scoped-VMEM limit derived from the actual tile footprint (+ headroom).

    Stays well under v7x's 64 MiB per-core VMEM while still allowing large
    tiles on v5e/v6e (128 MiB).
    """
    return int(min(max(footprint_bytes + (8 << 20), 16 << 20), 64 << 20))


# ---------------------------------------------------------------------------
# Kernel 1: fused QKV projection.  x (M, K) @ W (3, K, N) + b (3, 1, N)
#           -> packed (3, M, N) output.  f32 MXU accumulation in VMEM scratch.
# Grid: (M/tm, 3, N/tn, K/tk), reduction axis last.
# ---------------------------------------------------------------------------
def _qkv_proj_kernel(x_ref, w_ref, b_ref, o_ref, acc_ref):
    k = pl.program_id(3)

    @pl.when(k == 0)
    def _():
        acc_ref[...] = jnp.zeros(acc_ref.shape, acc_ref.dtype)

    acc_ref[...] += jnp.dot(x_ref[...], w_ref[...],
                            preferred_element_type=jnp.float32)

    @pl.when(k == pl.num_programs(3) - 1)
    def _():
        o_ref[...] = (acc_ref[...]
                      + b_ref[...].astype(jnp.float32)).astype(o_ref.dtype)


def pallas_qkv_proj(x2d, w3, b3, out_dtype=jnp.bfloat16, tm=512, tn=512, tk=512):
    """x2d: (M, K), w3: (3, K, N), b3: (3, 1, N) f32 -> (3, M, N)."""
    M, K = x2d.shape
    _, Kw, N = w3.shape
    assert Kw == K
    tm, Mp = _tile_dim(M, tm)
    tk, Kp = _tile_dim(K, tk)
    tn, Np = _tile_dim(N, tn)

    if (Mp, Kp) != (M, K):
        x2d = jnp.pad(x2d, ((0, Mp - M), (0, Kp - K)))
    if (Kp, Np) != (K, N):
        w3 = jnp.pad(w3, ((0, 0), (0, Kp - K), (0, Np - N)))
    if Np != N:
        b3 = jnp.pad(b3, ((0, 0), (0, 0), (0, Np - N)))

    grid = (Mp // tm, 3, Np // tn, Kp // tk)
    e_in = x2d.dtype.itemsize
    e_out = jnp.dtype(out_dtype).itemsize
    footprint = (2 * (tm * tk + tk * tn) * e_in + 2 * tn * 4
                 + 2 * tm * tn * e_out + tm * tn * 4)
    cost = pl.CostEstimate(
        flops=2 * 3 * Mp * Np * Kp,
        transcendentals=0,
        bytes_accessed=(3 * (Np // tn) * Mp * Kp * e_in
                        + (Mp // tm) * 3 * Kp * Np * e_in
                        + 3 * Mp * Np * e_out + 3 * Np * 4),
    )

    out = pl.pallas_call(
        _qkv_proj_kernel,
        out_shape=jax.ShapeDtypeStruct((3, Mp, Np), out_dtype),
        grid=grid,
        in_specs=[
            pl.BlockSpec((tm, tk), lambda i, j, n, k: (i, k)),
            pl.BlockSpec((None, tk, tn), lambda i, j, n, k: (j, k, n)),
            pl.BlockSpec((None, 1, tn), lambda i, j, n, k: (j, 0, n)),
        ],
        out_specs=pl.BlockSpec((None, tm, tn), lambda i, j, n, k: (j, i, n)),
        scratch_shapes=[pltpu.VMEM((tm, tn), jnp.float32)],
        compiler_params=pltpu.CompilerParams(
            dimension_semantics=("parallel", "parallel", "parallel", "arbitrary"),
            vmem_limit_bytes=_vmem_limit(footprint)),
        cost_estimate=cost,
    )(x2d, w3, b3)

    if (Mp, Np) != (M, N):
        # TODO(synk): pick tiles dividing M/N to avoid this slice copy.
        out = out[:, :M, :N]
    return out


# ---------------------------------------------------------------------------
# Kernel 2: tiled linear with f32 output, accumulating directly into the
#           resident output block (no VMEM accumulator scratch).
# ---------------------------------------------------------------------------
def _linear_f32_kernel(x_ref, w_ref, b_ref, o_ref):
    k = pl.program_id(2)

    @pl.when(k == 0)
    def _():
        o_ref[...] = jnp.broadcast_to(b_ref[...].astype(jnp.float32), o_ref.shape)

    o_ref[...] += jnp.dot(x_ref[...], w_ref[...],
                          preferred_element_type=jnp.float32)


def pallas_linear_f32(x2d, w, b, tm=512, tn=512, tk=512):
    """x2d: (M, K), w: (K, N), b: (1, N) f32 -> f32 (M, N) = x @ w + b."""
    M, K = x2d.shape
    Kw, N = w.shape
    assert Kw == K
    tm, Mp = _tile_dim(M, tm)
    tk, Kp = _tile_dim(K, tk)
    tn, Np = _tile_dim(N, tn)

    if (Mp, Kp) != (M, K):
        x2d = jnp.pad(x2d, ((0, Mp - M), (0, Kp - K)))
    if (Kp, Np) != (K, N):
        w = jnp.pad(w, ((0, Kp - K), (0, Np - N)))
    if Np != N:
        b = jnp.pad(b, ((0, 0), (0, Np - N)))

    grid = (Mp // tm, Np // tn, Kp // tk)
    e_in = x2d.dtype.itemsize
    footprint = 2 * (tm * tk + tk * tn) * e_in + 2 * tn * 4 + 2 * tm * tn * 4
    cost = pl.CostEstimate(
        flops=2 * Mp * Np * Kp,
        transcendentals=0,
        bytes_accessed=((Np // tn) * Mp * Kp * e_in
                        + (Mp // tm) * Kp * Np * e_in
                        + Mp * Np * 4 + Np * 4),
    )

    out = pl.pallas_call(
        _linear_f32_kernel,
        out_shape=jax.ShapeDtypeStruct((Mp, Np), jnp.float32),
        grid=grid,
        in_specs=[
            pl.BlockSpec((tm, tk), lambda i, j, k: (i, k)),
            pl.BlockSpec((tk, tn), lambda i, j, k: (k, j)),
            pl.BlockSpec((1, tn), lambda i, j, k: (0, j)),
        ],
        out_specs=pl.BlockSpec((tm, tn), lambda i, j, k: (i, j)),
        compiler_params=pltpu.CompilerParams(
            dimension_semantics=("parallel", "parallel", "arbitrary"),
            vmem_limit_bytes=_vmem_limit(footprint)),
        cost_estimate=cost,
    )(x2d, w, b)

    if (Mp, Np) != (M, N):
        out = out[:M, :N]
    return out


# ---------------------------------------------------------------------------
# Kernel 3: flash-style multi-head attention with fused in-kernel head merge.
#   grid = (B, Sq/tq, Sk/tk); KV axis last ("arbitrary"); heads unrolled.
#   Q is already pre-scaled by 1/sqrt(depth) (folded into the projection).
#   causal=True  -> mask built in-kernel from iota; fully-masked KV tiles skipped.
#   has_mask=True-> a streamed (tq, tkv) f32 mask block (torch `mask * -1e9`).
# ---------------------------------------------------------------------------
def _flash_mha_kernel(*refs, num_heads, causal, has_mask):
    if has_mask:
        q_ref, k_ref, v_ref, mask_ref, o_ref, m_sc, l_sc, acc_sc = refs
    else:
        q_ref, k_ref, v_ref, o_ref, m_sc, l_sc, acc_sc = refs

    qi = pl.program_id(1)
    ki = pl.program_id(2)
    tq = q_ref.shape[0]
    tkv = k_ref.shape[0]
    d_model = q_ref.shape[1]
    depth = d_model // num_heads

    @pl.when(ki == 0)
    def _():
        m_sc[...] = jnp.full(m_sc.shape, -jnp.inf, m_sc.dtype)
        l_sc[...] = jnp.zeros(l_sc.shape, l_sc.dtype)
        acc_sc[...] = jnp.zeros(acc_sc.shape, acc_sc.dtype)

    def tile_body():
        q = q_ref[...]              # (tq, D)  compute dtype (bf16), pre-scaled
        k = k_ref[...]              # (tkv, D)
        v = v_ref[...]              # (tkv, D)

        if causal:
            row = qi * tq + lax.broadcasted_iota(jnp.int32, (tq, tkv), 0)
            col = ki * tkv + lax.broadcasted_iota(jnp.int32, (tq, tkv), 1)
            bias = jnp.where(col > row, jnp.float32(-1e9), jnp.float32(0.0))
        elif has_mask:
            bias = mask_ref[...] * jnp.float32(-1e9)
        else:
            bias = None

        # NOTE: depth < 128 under-fills the 256-wide MXU on v6e/v7x; prefer
        # configs with depth >= 128 for peak FLOP efficiency.
        # TODO(synk): for large num_heads switch to lax.fori_loop over heads
        # (pl.ds slices) to bound vreg live ranges.
        for h in range(num_heads):
            lo = h * depth
            # (tq, depth) x (tkv, depth), contracting last dims -> (tq, tkv) f32
            s = lax.dot_general(q[:, lo:lo + depth], k[:, lo:lo + depth],
                                (((1,), (1,)), ((), ())),
                                preferred_element_type=jnp.float32)
            if bias is not None:
                s = s + bias
            m_prev = m_sc[h]                                     # (tq, 1)
            m_new = jnp.maximum(m_prev, s.max(axis=-1, keepdims=True))
            alpha = jnp.exp(m_prev - m_new)
            p = jnp.exp(s - m_new)                               # (tq, tkv) f32
            l_sc[h] = alpha * l_sc[h] + p.sum(axis=-1, keepdims=True)
            acc_sc[h] = alpha * acc_sc[h] + jnp.dot(
                p.astype(v.dtype), v[:, lo:lo + depth],
                preferred_element_type=jnp.float32)
            m_sc[h] = m_new

    if causal:
        # Skip KV tiles that lie entirely above the causal diagonal.
        pl.when(ki * tkv <= (qi + 1) * tq - 1)(tile_body)
    else:
        tile_body()

    @pl.when(ki == pl.num_programs(2) - 1)
    def _():
        inv = pl.reciprocal(l_sc[...], approx=True)              # EUP, (H, tq, 1)
        parts = [acc_sc[h] * inv[h] for h in range(num_heads)]
        # One lane-dense (tq, D) store (no per-head masked sub-128-lane stores).
        o_ref[...] = jnp.concatenate(parts, axis=-1).astype(o_ref.dtype)


def _attention_call(arrays, in_specs, *, batch, sq_p, d_model, n_kv_blocks,
                    num_heads, tq, tkv, causal, has_mask, out_dtype):
    depth = d_model // num_heads
    kernel = functools.partial(_flash_mha_kernel, num_heads=num_heads,
                               causal=causal, has_mask=has_mask)
    e = jnp.dtype(out_dtype).itemsize
    footprint = (2 * (tq + 2 * tkv) * d_model * e          # double-buffered q/k/v
                 + (2 * tq * tkv * 4 if has_mask else 0)   # mask blocks
                 + 2 * tq * d_model * e                    # output block
                 + num_heads * tq * (depth + 2) * 4)       # online-softmax state
    cost = pl.CostEstimate(
        flops=4 * batch * sq_p * n_kv_blocks * tkv * d_model,
        transcendentals=batch * num_heads * sq_p * n_kv_blocks * tkv,
        bytes_accessed=(2 * batch * sq_p * d_model
                        + 2 * batch * n_kv_blocks * tkv * d_model) * e,
    )
    return pl.pallas_call(
        kernel,
        out_shape=jax.ShapeDtypeStruct((batch, sq_p, d_model), out_dtype),
        grid=(batch, sq_p // tq, n_kv_blocks),
        in_specs=in_specs,
        out_specs=pl.BlockSpec((None, tq, d_model), lambda b, qi, ki: (b, qi, 0)),
        scratch_shapes=[
            pltpu.VMEM((num_heads, tq, 1), jnp.float32),      # running max
            pltpu.VMEM((num_heads, tq, 1), jnp.float32),      # running denom
            pltpu.VMEM((num_heads, tq, depth), jnp.float32),  # running numerator
        ],
        compiler_params=pltpu.CompilerParams(
            dimension_semantics=("parallel", "parallel", "arbitrary"),
            vmem_limit_bytes=_vmem_limit(footprint)),
        cost_estimate=cost,
    )(*arrays)


def pallas_flash_mha_packed(qkv, num_heads, mask=None, causal=False,
                            tq=512, tkv=512):
    """qkv: (3, B, S, D) packed Q/K/V (Q pre-scaled) -> (B, S, D).

    Q/K/V are selected from the packed tensor purely via BlockSpec index maps
    (leading-axis block index 0/1/2): no per-projection slice copies hit HBM.
    """
    _, B, S, D = qkv.shape
    tq, Sp = _pick_q_tile(B, S, tq)
    if tkv > Sp or Sp % tkv:
        tkv = tq
    if Sp != S:
        # TODO(synk): avoid this pad copy by choosing S as a multiple of the tile.
        qkv = jnp.pad(qkv, ((0, 0), (0, 0), (0, Sp - S), (0, 0)))
        if mask is None and not causal:
            mask = jnp.zeros((S, S), jnp.float32)   # key-padding must be masked

    arrays = [qkv, qkv, qkv]
    in_specs = [
        pl.BlockSpec((None, None, tq, D), lambda b, qi, ki: (0, b, qi, 0)),
        pl.BlockSpec((None, None, tkv, D), lambda b, qi, ki: (1, b, ki, 0)),
        pl.BlockSpec((None, None, tkv, D), lambda b, qi, ki: (2, b, ki, 0)),
    ]
    has_mask = (mask is not None) and (not causal)
    if has_mask:
        m = mask.astype(jnp.float32)
        if Sp != S:
            m = jnp.pad(m, ((0, 0), (0, Sp - S)), constant_values=1.0)
            m = jnp.pad(m, ((0, Sp - S), (0, 0)), constant_values=0.0)
        arrays.append(m)
        in_specs.append(pl.BlockSpec((tq, tkv), lambda b, qi, ki: (qi, ki)))

    out = _attention_call(arrays, in_specs, batch=B, sq_p=Sp, d_model=D,
                          n_kv_blocks=Sp // tkv, num_heads=num_heads,
                          tq=tq, tkv=tkv, causal=causal, has_mask=has_mask,
                          out_dtype=qkv.dtype)
    return out[:, :S, :] if Sp != S else out


def pallas_flash_mha(q, k, v, mask, num_heads, causal=False, tq=512, tkv=512):
    """q: (B, Sq, D) pre-scaled, k/v: (B, Sk, D) -> (B, Sq, D).

    Fallback path for separate K/V (e.g. with a `past` KV cache).
    """
    B, Sq, D = q.shape
    Sk = k.shape[1]
    tq, Sq_p = _pick_q_tile(B, Sq, tq)
    tkv, Sk_p = _tile_dim(Sk, tkv)

    if Sq_p != Sq:
        q = jnp.pad(q, ((0, 0), (0, Sq_p - Sq), (0, 0)))
    if Sk_p != Sk:
        k = jnp.pad(k, ((0, 0), (0, Sk_p - Sk), (0, 0)))
        v = jnp.pad(v, ((0, 0), (0, Sk_p - Sk), (0, 0)))
        if mask is None and not causal:
            mask = jnp.zeros((Sq, Sk), jnp.float32)  # key-padding must be masked

    arrays = [q, k, v]
    in_specs = [
        pl.BlockSpec((None, tq, D), lambda b, qi, ki: (b, qi, 0)),
        pl.BlockSpec((None, tkv, D), lambda b, qi, ki: (b, ki, 0)),
        pl.BlockSpec((None, tkv, D), lambda b, qi, ki: (b, ki, 0)),
    ]
    has_mask = (mask is not None) and (not causal)
    if has_mask:
        m = mask.astype(jnp.float32)
        if Sk_p != Sk:
            m = jnp.pad(m, ((0, 0), (0, Sk_p - Sk)), constant_values=1.0)
        if Sq_p != Sq:
            m = jnp.pad(m, ((0, Sq_p - Sq), (0, 0)), constant_values=0.0)
        arrays.append(m)
        in_specs.append(pl.BlockSpec((tq, tkv), lambda b, qi, ki: (qi, ki)))

    out = _attention_call(arrays, in_specs, batch=B, sq_p=Sq_p, d_model=D,
                          n_kv_blocks=Sk_p // tkv, num_heads=num_heads,
                          tq=tq, tkv=tkv, causal=causal, has_mask=has_mask,
                          out_dtype=q.dtype)
    return out[:, :Sq, :] if Sq_p != Sq else out


# ---------------------------------------------------------------------------
# Module wrapper.
# ---------------------------------------------------------------------------
class MultiHeadAttentionPallas:
    def __init__(self, d_model_size, num_heads, key, compute_dtype=jnp.bfloat16):
        assert d_model_size % num_heads == 0
        self.num_heads = num_heads
        self.d_model_size = d_model_size
        self.depth = d_model_size // num_heads
        self.compute_dtype = compute_dtype

        ks = jax.random.split(key, 8)
        bound = 1.0 / np.sqrt(d_model_size)

        def init_w(kk):
            return jax.random.uniform(kk, (d_model_size, d_model_size),
                                      jnp.float32, -bound, bound)

        def init_b(kk):
            return jax.random.uniform(kk, (1, d_model_size),
                                      jnp.float32, -bound, bound)

        # f32 master weights (also used by the pure-JAX reference)
        self.Wq, self.bq = init_w(ks[0]), init_b(ks[1])
        self.Wk, self.bk = init_w(ks[2]), init_b(ks[3])
        self.Wv, self.bv = init_w(ks[4]), init_b(ks[5])
        self.Wd, self.bd = init_w(ks[6]), init_b(ks[7])

        # Packed QKV weights in compute dtype.  The 1/sqrt(depth) softmax scale
        # is folded into the Q projection so the attention kernel never rescales.
        # TODO(synk): optionally store these weights in fp8 on v7x (needs
        # accuracy validation; fp8 is not drop-in).
        scale = 1.0 / float(np.sqrt(self.depth))
        self.Wqkv_c = jnp.stack(
            [self.Wq * scale, self.Wk, self.Wv], axis=0).astype(compute_dtype)
        self.bqkv = jnp.stack([self.bq * scale, self.bk, self.bv], axis=0)  # f32
        self.Wd_c = self.Wd.astype(compute_dtype)

    def __call__(self, x, mask, past=None, causal=False):
        B, S, D = x.shape
        x2d = x.reshape(B * S, D).astype(self.compute_dtype)

        # Fused QKV projection -> packed (3, B*S, D); the reshape below is free.
        qkv = pallas_qkv_proj(x2d, self.Wqkv_c, self.bqkv,
                              out_dtype=self.compute_dtype)
        qkv = qkv.reshape(3, B, S, D)

        if past is None:
            # Attention reads Q/K/V directly from the packed tensor (no slices).
            attn = pallas_flash_mha_packed(qkv, self.num_heads, mask=mask,
                                           causal=causal)
            # Only materialized to honor the `past = [k, v]` cache API.
            new_past = [qkv[1], qkv[2]]
        else:
            # TODO(synk): decode path should update a preallocated KV cache in
            # place via input_output_aliases instead of concatenating per step.
            q = qkv[0]
            k = jnp.concatenate((past[0].astype(self.compute_dtype), qkv[1]), axis=1)
            v = jnp.concatenate((past[1].astype(self.compute_dtype), qkv[2]), axis=1)
            if mask is not None:
                mask = jnp.concatenate(
                    (jnp.zeros((S, k.shape[1] - S), jnp.float32),
                     mask.astype(jnp.float32)), axis=1)
            attn = pallas_flash_mha(q, k, v, mask, self.num_heads)
            new_past = [k, v]

        out = pallas_linear_f32(attn.reshape(-1, D), self.Wd_c, self.bd)
        return out.reshape(B, S, D), new_past


# ---------------------------------------------------------------------------
# Pure-JAX f32 reference for verification.
# ---------------------------------------------------------------------------
def reference_forward(mod, x, mask):
    B, S, D = x.shape
    q = x @ mod.Wq + mod.bq
    k = x @ mod.Wk + mod.bk
    v = x @ mod.Wv + mod.bv
    split = lambda t: jnp.transpose(
        t.reshape(B, S, mod.num_heads, mod.depth), (0, 2, 1, 3))
    qh, kh, vh = split(q), split(k), split(v)
    logits = jnp.einsum("bhqd,bhkd->bhqk", qh, kh) / np.sqrt(mod.depth)
    logits = logits + mask * (-1e9)
    w = jax.nn.softmax(logits, axis=-1)
    o = jnp.einsum("bhqk,bhkd->bhqd", w, vh)
    o = jnp.transpose(o, (0, 2, 1, 3)).reshape(B, S, D)
    return o @ mod.Wd + mod.bd


if __name__ == "__main__":
    B, S, D, H = 2, 8, 32, 4
    key = jax.random.PRNGKey(0)
    k_param, k_x = jax.random.split(key)

    mod = MultiHeadAttentionPallas(D, H, k_param)
    x = jax.random.normal(k_x, (B, S, D), jnp.float32)
    # causal mask: 1 where attention is disallowed (matches `mask * -1e9`)
    mask = jnp.triu(jnp.ones((S, S), jnp.float32), k=1)

    # Main path: in-kernel causal mask + masked-tile skipping.
    out_causal, past = mod(x, mask, past=None, causal=True)
    # General (streamed) mask path, same semantics as the PyTorch module.
    out_masked, _ = mod(x, mask, past=None, causal=False)
    jax.block_until_ready((out_causal, out_masked, past[0], past[1]))

    ref = reference_forward(mod, x, mask)
    # bf16 MXU inputs with f32 accumulation -> compare at bf16-level tolerance
    np.testing.assert_allclose(np.asarray(out_causal, dtype=np.float32),
                               np.asarray(ref), rtol=5e-2, atol=5e-2)
    np.testing.assert_allclose(np.asarray(out_masked, dtype=np.float32),
                               np.asarray(ref), rtol=5e-2, atol=5e-2)

    # Incremental-decode (`past`) path: last-token output must match full pass.
    mask_prefix = jnp.triu(jnp.ones((S - 1, S - 1), jnp.float32), k=1)
    _, past_prefix = mod(x[:, :S - 1], mask_prefix, past=None, causal=True)
    out_step, _ = mod(x[:, S - 1:], jnp.zeros((1, 1), jnp.float32),
                      past=past_prefix)
    jax.block_until_ready(out_step)
    np.testing.assert_allclose(np.asarray(out_step, dtype=np.float32),
                               np.asarray(out_causal)[:, S - 1:],
                               rtol=5e-2, atol=5e-2)

    print("KERNEL_OK")
</pallas_src>

<mosaic_0001>
module attributes {stable_mosaic.version = 11 : i64} {
  func.func @_qkv_proj_kernel(%arg0: i32, %arg1: i32, %arg2: i32, %arg3: i32, %arg4: memref<16x32xbf16, #tpu.memory_space<vmem>>, %arg5: memref<1x32x32xbf16, #tpu.memory_space<vmem>>, %arg6: memref<1x1x32xf32, #tpu.memory_space<vmem>>, %arg7: memref<1x16x32xbf16, #tpu.memory_space<vmem>>, %arg8: memref<16x32xf32, #tpu.memory_space<vmem>>) attributes {dimension_semantics = [#tpu.dimension_semantics<parallel>, #tpu.dimension_semantics<parallel>, #tpu.dimension_semantics<parallel>, #tpu.dimension_semantics<arbitrary>], iteration_bounds = array<i64: 1, 3, 1, 1>, scalar_prefetch = 0 : i64, scratch_operands = 1 : i64, tpu.core_type = #tpu.core_type<tc>, window_params = [{transform_indices = @transform_0, window_bounds = array<i64: 16, 32>}, {transform_indices = @transform_1, window_bounds = array<i64: 1, 32, 32>}, {transform_indices = @transform_2, window_bounds = array<i64: 1, 1, 32>}, {transform_indices = @transform_3, window_bounds = array<i64: 1, 16, 32>}]} {
    %c0_i32 = arith.constant 0 : i32
    %0 = arith.cmpi eq, %arg3, %c0_i32 : i32
    %1 = arith.extui %0 : i1 to i32
    %c0_i32_0 = arith.constant 0 : i32
    %2 = arith.cmpi ne, %1, %c0_i32_0 : i32
    scf.if %2 {
      %cst_11 = arith.constant 0.000000e+00 : f32
      %13 = vector.broadcast %cst_11 : f32 to vector<16x32xf32>
      %c0_12 = arith.constant 0 : index
      %c0_13 = arith.constant 0 : index
      %14 = vector.load %arg8[%c0_12, %c0_13] : memref<16x32xf32, #tpu.memory_space<vmem>>, vector<16x32xf32>
      tpu.vector_store %arg8[%c0_12, %c0_13], %13 {strides = array<i32>} : memref<16x32xf32, #tpu.memory_space<vmem>>, vector<16x32xf32>,
    } else {
    }
    %c0 = arith.constant 0 : index
    %c0_1 = arith.constant 0 : index
    %3 = vector.load %arg8[%c0, %c0_1] : memref<16x32xf32, #tpu.memory_space<vmem>>, vector<16x32xf32>
    %c0_2 = arith.constant 0 : index
    %c0_3 = arith.constant 0 : index
    %4 = vector.load %arg4[%c0_2, %c0_3] : memref<16x32xbf16, #tpu.memory_space<vmem>>, vector<16x32xbf16>
    %c0_4 = arith.constant 0 : index
    %c0_5 = arith.constant 0 : index
    %c0_6 = arith.constant 0 : index
    %5 = vector.load %arg5[%c0_4, %c0_5, %c0_6] : memref<1x32x32xbf16, #tpu.memory_space<vmem>>, vector<1x32x32xbf16>
    %6 = vector.shape_cast %5 : vector<1x32x32xbf16> to vector<32x32xbf16>
    %cst = arith.constant dense<0.000000e+00> : vector<16x32xf32>
    %7 = tpu.matmul %4, %6, %cst {dimension_numbers = #tpu.dot_dimension_numbers<[1], [0], [0], [1], [0, 0, 1, 1], [], []>} : vector<16x32xbf16>, vector<32x32xbf16>, vector<16x32xf32> -> vector<16x32xf32>
    %8 = arith.addf %3, %7 : vector<16x32xf32>
    %c0_7 = arith.constant 0 : index
    %c0_8 = arith.constant 0 : index
    %9 = vector.load %arg8[%c0_7, %c0_8] : memref<16x32xf32, #tpu.memory_space<vmem>>, vector<16x32xf32>
    tpu.vector_store %arg8[%c0_7, %c0_8], %8 {strides = array<i32>} : memref<16x32xf32, #tpu.memory_space<vmem>>, vector<16x32xf32>,
    %c0_i32_9 = arith.constant 0 : i32
    %10 = arith.cmpi eq, %arg3, %c0_i32_9 : i32
    %11 = arith.extui %10 : i1 to i32
    %c0_i32_10 = arith.constant 0 : i32
    %12 = arith.cmpi ne, %11, %c0_i32_10 : i32
    scf.if %12 {
      %c0_11 = arith.constant 0 : index
      %c0_12 = arith.constant 0 : index
      %13 = vector.load %arg8[%c0_11, %c0_12] : memref<16x32xf32, #tpu.memory_space<vmem>>, vector<16x32xf32>
      %c0_13 = arith.constant 0 : index
      %c0_14 = arith.constant 0 : index
      %c0_15 = arith.constant 0 : index
      %14 = vector.load %arg6[%c0_13, %c0_14, %c0_15] : memref<1x1x32xf32, #tpu.memory_space<vmem>>, vector<1x1x32xf32>
      %15 = vector.shape_cast %14 : vector<1x1x32xf32> to vector<1x32xf32>
      %16 = vector.broadcast %15 : vector<1x32xf32> to vector<16x32xf32>
      %17 = arith.addf %13, %16 : vector<16x32xf32>
      %18 = arith.truncf %17 : vector<16x32xf32> to vector<16x32xbf16>
      %c0_16 = arith.constant 0 : index
      %c0_17 = arith.constant 0 : index
      %c0_18 = arith.constant 0 : index
      %19 = vector.load %arg7[%c0_16, %c0_17, %c0_18] : memref<1x16x32xbf16, #tpu.memory_space<vmem>>, vector<1x16x32xbf16>
      %20 = vector.shape_cast %19 : vector<1x16x32xbf16> to vector<16x32xbf16>
      %21 = vector.shape_cast %18 : vector<16x32xbf16> to vector<1x16x32xbf16>
      tpu.vector_store %arg7[%c0_16, %c0_17, %c0_18], %21 {strides = array<i32>} : memref<1x16x32xbf16, #tpu.memory_space<vmem>>, vector<1x16x32xbf16>,
    } else {
    }
    return
  }
  func.func @transform_0(%arg0: i32, %arg1: i32, %arg2: i32, %arg3: i32) -> (i32, i32) {
    %c0_i32 = arith.constant 0 : i32
    return %arg0, %arg3 : i32, i32
  }
  func.func @transform_1(%arg0: i32, %arg1: i32, %arg2: i32, %arg3: i32) -> (i32, i32, i32) {
    %c0_i32 = arith.constant 0 : i32
    return %arg1, %arg3, %arg2 : i32, i32, i32
  }
  func.func @transform_2(%arg0: i32, %arg1: i32, %arg2: i32, %arg3: i32) -> (i32, i32, i32) {
    %c0_i32 = arith.constant 0 : i32
    %c0_i32_0 = arith.constant 0 : i32
    return %arg1, %c0_i32, %arg2 : i32, i32, i32
  }
  func.func @transform_3(%arg0: i32, %arg1: i32, %arg2: i32, %arg3: i32) -> (i32, i32, i32) {
    %c0_i32 = arith.constant 0 : i32
    return %arg1, %arg0, %arg2 : i32, i32, i32
  }
}

</mosaic_0001>

<bundles_post_ra>
// kernel: tpu_custom_call.1
= control target key start
LH: loop header
LB: loop body
LE: loop exit
PB: predicated region body
PF: predicated region fallthrough
CT: control target
= control target key end

     0   :  { %8 = vsyncpa [#allocation4], 0  ;;  %s1013_s0 = inlined_call_operand.hbm [shape: bf16[16,32], index: 0, kind: input, shape index: {}]   ;;  %s1014_s1 = inlined_call_operand.hbm [shape: bf16[3,32,32], index: 1, kind: input, shape index: {}]   ;;  %s1015_s2 = inlined_call_operand.vmem [shape: f32[3,1,32], index: 2, kind: input, shape index: {}]   ;;  %s1016_s3 = inlined_call_operand.hbm [shape: bf16[3,16,32], index: 3, kind: output, shape index: {}]  }
   0x1   :  { %9 = vsyncpa [#allocation7], 0 }
   0x2   :  { %11 = vsyncpa [#allocation7 + $0x1], 0 }
   0x3   :  { %12 = vsyncpa [#allocation5], 0 }
   0x4   :  { %14 = vsyncpa [#allocation5 + $0x1], 0  ;;  %s817_s12 = smov 0   ;;  %s819_s13 = smov 0  }
   0x5   :  { %s821_s14 = smov 0   ;;  %s823_s15 = smov 0  }
   0x6   :  { %s825_s16 = smov 0   ;;  %s827_s17 = smov 0  }
   0x7 LB: > { %s527_s18 = sadd.s32 4294967295, %s786_s17   ;;  %s528_s19 = sadd.s32 4294967294, %s786_s17   ;;  %s786_s17 = sphi %s827_s17, %s20_s17   ;;  %s782_s16 = sphi %s825_s16, %s1037_s16   ;;  %s778_s15 = sphi %s823_s15, %s1036_s15   ;;  %s774_s14 = sphi %s821_s14, %s1035_s14   ;;  %s770_s13 = sphi %s819_s13, %s1034_s13   ;;  %s766_s12 = sphi %s817_s12, %s1033_s12  }
   0x8   : > { %p98_p0 = scmp.ne.s32.totalorder %s770_s13, %s766_s12  ;;  %p851_p1 = scmp.eq.s32.totalorder %s527_s18, 0 }
   0x9   : > { %p855_p2 = scmp.eq.s32.totalorder %s527_s18, 2  ;;  %p160_p3 = scmp.eq.s32.totalorder %s528_s19, 2 }
   0xa   : > { %p861_p4 = por %p851_p1, %p98_p0  ;;  %p529_p5 = scmp.ge.s32.totalorder %s786_s17, 1 }
   0xb   : > { %p866_p6 = por %p160_p3, %p98_p0  ;;  %p167_p7 = scmp.lt.s32.totalorder %s786_s17, 4 }
   0xc   : > { %s788_s25 = smov [#allocation3]   ;;  %s42_s28 = sadd.s32 1, %s782_s16 }
   0xd   : > { %s1023_s23 = scalar_select %p866_p6, 1, 0 }
   0xe   : > { %p871_p8 = pnand %p529_p5, %p167_p7  ;;  %s183_s26 = sshll.u32 %s788_s25, 4  ;;  %s184_s26 = int_to_ptr.vmem [resolvable:$true] %s183_s26 }
   0xf   : > { %s659_s29 = scalar_lea.vmem %s184_s26, 128  ;;  %p667_p3 = scmp.lt.s32.totalorder %s184_s26, %s184_s26 }
  0x10   : > { %p574_p9 = pneg %p871_p8  ;;  %p660_p12 = scmp.ne.s32.totalorder %s184_s26, %s659_s29 }
  0x11   : > { %p668_p5 = scmp.lt.s32.totalorder %s659_s29, %s659_s29 }
  0x12   : > { %p879_p10 = pnand %p574_p9, %p851_p1 }
  0x13   : > { %p669_p7 = por %p668_p5, %p667_p3 }
  0x14   : > { %p650_p11 = pneg %p879_p10 }
  0x16   : > { %p662_p13 = pnand %p660_p12, %p650_p11 }
  0x18   : > { %p663_p0 = pneg %p662_p13 }
  0x1a   : > { %p670_p6 = pnand %p669_p7, %p663_p0 }
  0x1c   : > { %673 = shalt.err (!%p670_p6)
}
  0x1d   : > { %s1017_s30 = smov 64   ;;  %s1018_s4 = smov 4  }
  0x1e   : > { %577 = dma.hbm_to_vmem [thread:$0]  (!%p879_p10), %s1013_s0, 128, %s184_s26, [#allocation4], %s1017_s30, %s1017_s30, %s1018_s4  }
  0x1f   : > { %p44_p6 = scmp.ge.s32.totalorder %s42_s28, 3  ;;  %s85_s7 = sadd.s32 1, %s774_s14 }
  0x20   : > { %p92_p9 = scmp.ne.s32.totalorder %s774_s14, %s770_s13  ;;  %p93_p11 = scmp.eq.s32.totalorder %s786_s17, 0 }
  0x21   : > { %s1039_s28 = smov (%p44_p6, %s42_s28), 0  ;;  %p587_p0 = scmp.lt.s32.totalorder %s786_s17, 3 }
  0x22   : > { %p900_p12 = por %p93_p11, %p92_p9  ;;  %p906_p13 = por %p855_p2, %p92_p9 }
  0x23   : > { %s78_s10 = ssub.s32 %s782_s16, %s1039_s28  ;;  %s197_s11 = sand.u32 1, %s774_s14  }
  0x24   : > { %s1027_s9 = scalar_select %p906_p13, 1, 0 }
  0x25   : > { %p83_p10 = scmp.eq.s32.totalorder %s78_s10, 0  ;;  %s532_s18 = sshll.u32 %s197_s11, 4 }
  0x26   : > { %s551_s25 = sshll.u32 %s782_s16, 8  ;;  %s201_s5 = scalar_lea.vmem [#allocation6], %s532_s18 }
  0x27   : > { %s915_s19 = scalar_select %p83_p10, %s774_s14, %s85_s7  }
  0x28   : > { %s210_s29 = scalar_lea.hbm %s1014_s1, %s551_s25  ;;  %s211_s6 = sshll.u32 %s201_s5, 4  ;;  %s212_s6 = int_to_ptr.vmem [resolvable:$true] %s211_s6 }
  0x29   : > { %p923_p2 = pnand %p587_p0, %p900_p12  ;;  %s198_s30 = scalar_lea.sflag [#allocation7], %s197_s11 }
  0x2a   : > { %s687_s10 = scalar_lea.vmem %s212_s6, 256  ;;  %s791_s7 = smov [#allocation6]  }
  0x2b   : > { %p676_p3 = pneg %p923_p2  ;;  %p688_p5 = scmp.ne.s32.totalorder %s212_s6, %s687_s10 }
  0x2c   : > { %s692_s4 = sshll.u32 %s791_s7, 4  ;;  %s693_s4 = int_to_ptr.vmem [resolvable:$false] %s692_s4 }
  0x2d   : > { %p690_p7 = pnand %p688_p5, %p676_p3  ;;  %s694_s25 = scalar_lea.vmem %s693_s4, 512 }
  0x2e   : > { %p695_p9 = scmp.lt.s32.totalorder %s212_s6, %s693_s4  ;;  %p696_p11 = scmp.lt.s32.totalorder %s694_s25, %s687_s10 }
  0x2f   : > { %p691_p6 = pneg %p690_p7 }
  0x30   : > { %p697_p10 = por %p696_p11, %p695_p9 }
  0x32   : > { %p698_p13 = pnand %p697_p10, %p691_p6 }
  0x34   : > { %701 = shalt.err (!%p698_p13)
}
  0x35   : > { %s1029_s8 = smov 4   ;;  %s1030_s18 = smov 64  }
  0x36   : > { %581 = dma.hbm_to_vmem [thread:$0]  (!%p923_p2), %s210_s29, 256, %s212_s6, %s198_s30, %s1030_s18, %s1030_s18, %s1029_s8  }
  0x37   : > { %232 = sbr.rel (%p871_p8) target bundleno = 299 (0x12b), region = 32 }
  0x3c   : > { %753 = dma.done.wait (%p851_p1), [#allocation4], 128  }
  0x3d   : > { %755 = vsyncadd (%p851_p1), [#allocation4], 4294967168  ;;  %s941_s4 = sand.u32 1, %s770_s13  }
  0x3e   : > { %s537_s11 = sshll.u32 %s941_s4, 4  ;;  %s239_s26 = scalar_lea.sflag [#allocation7], %s941_s4 }
  0x3f   : > { %s242_s27 = scalar_lea.vmem [#allocation6], %s537_s11 }
  0x40   : > { %757 = dma.done.wait (%p861_p4), %s239_s26, 256  }
  0x41   : > { %759 = vsyncadd (%p861_p4), %s239_s26, 4294967040  ;;  %vm285_vm0 = vcmask 261120   ;;  %v792_v0 = vmov 0.0   ;;  %vm793_vm1 = vmmov 0   ;;  %v645_v1 = vld [vmem:[%s242_s27 + $0x8] sm:$0xff]   ;;  %v646_v2 = vld [vmem:[%s242_s27] sm:$0xff]  }
  0x42   : > { %558 = vmatprep.subr.bf16.mxu0 %v792_v0  ;;  %562 = vmatprep.mubr.msk.bf16.mxu0 %vm793_vm1, %v792_v0  ;;  %286 = vst.msk [vmem:[#allocation2] sm:$0xff] %vm285_vm0, %v792_v0  ;;  %287 = vst.msk [vmem:[#allocation2 + $0x8] sm:$0xff] %vm285_vm0, %v792_v0  ;;  %v647_v3 = vld [vmem:[#allocation3] sm:$0xff]   ;;  %p273_p1 = scmp.lt.s32.totalorder %s778_s15, 2  ;;  %s538_s29 = sshll.u32 %s941_s4, 3  ;;  %vm384_vm2 = vcmask 257024  }
  0x43   : > { %559 = vmatpush3.bf16.msra.mxu0 %v645_v1  ;;  %s554_s5 = sshll.u32 %s778_s15, 7  ;;  %s270_s6 = scalar_lea.vmem [#allocation8], %s538_s29 }
  0x44   : > { %560 = vmatprep.subr.bf16.mxu0 %v792_v0  ;;  %s274_s20 = scalar_select %p273_p1, %s778_s15, 2 }
  0x45   : > { %s404_s21 = sshll.u32 %s270_s6, 4  ;;  %s964_s25 = scalar_lea.hbm %s1016_s3, %s554_s5  ;;  %s966_s21 = int_to_ptr.vmem [resolvable:$true] %s404_s21 }
  0x46   : > { %s278_s30 = scalar_lea.vmem %s1015_s2, %s274_s20  ;;  %s388_s8 = scalar_lea.sflag [#allocation5], %s941_s4 }
  0x47   : > { %561 = vmatpush3.bf16.msra.mxu0 %v646_v2  ;;  %v543_v12 = vld [vmem:[%s278_s30] ss:$0 sm:$0xff]  ;;  %s702_s18 = scalar_lea.vmem %s966_s21, 128  ;;  %p1031_p8 = scmp.ne.s32.totalorder %s1027_s9, 0 }
  0x48   : > { %p703_p4 = scmp.ne.s32.totalorder %s966_s21, %s702_s18  ;;  %s794_s15 = smov [#allocation8]  }
  0x49   : > { %v288_v4 = vld [vmem:[#allocation2] sm:$0xff]  ;;  %v289_v8 = vld [vmem:[#allocation2 + $0x8] sm:$0xff]  ;;  %s706_s11 = sshll.u32 %s794_s15, 4  ;;  %s707_s11 = int_to_ptr.vmem [resolvable:$false] %s706_s11 }
  0x4a   : > { %563 = vmatmul.mubr.msk.bf16.vlgmr.msra.gmra.mxu0 %vm285_vm0, %v647_v3  ;;  %p704_p12 = pnand %p703_p4, %p1031_p8  ;;  %s708_s26 = scalar_lea.vmem %s707_s11, 256 }
  0x4b   : > { %p709_p0 = scmp.lt.s32.totalorder %s966_s21, %s707_s11  ;;  %p710_p2 = scmp.lt.s32.totalorder %s708_s26, %s702_s18 }
  0x4c   : > { %p705_p13 = pneg %p704_p12 }
  0x4d   : > { %p711_p3 = por %p710_p2, %p709_p0 }
  0x4f   : > { %p712_p5 = pnand %p711_p3, %p705_p13 }
 0x10a   : > { %v351_v5 = vpop.f32.mrf.mxu0 }
 0x10b   : > { %v358_v6 = vadd.f32 %v351_v5, %v288_v4 }
 0x10c   : > { %v564_v7 = vpop.f32.mrf.mxu0 }
 0x10d   : > { %360 = vst.msk [vmem:[#allocation2] sm:$0xff] %vm285_vm0, %v358_v6 }
 0x10e   : > { %v354_v9 = vpop.f32.mrf.mxu0 }
 0x10f   : > { %v359_v10 = vadd.f32 %v354_v9, %v289_v8 }
 0x110   : > { %v565_v11 = vpop.f32.mrf.mxu0 }
 0x111   : > { %361 = vst.msk [vmem:[#allocation2 + $0x8] sm:$0xff] %vm285_vm0, %v359_v10 }
 0x114   : > { %v365_v13 = vld [vmem:[#allocation2] sm:$0xff] }
 0x115   : > { %v374_v14 = vadd.f32 %v543_v12, %v365_v13 }
 0x117   : > { %v552_v15 = vpack.c.bf16 %v374_v14, %v374_v14 }
 0x118   : > { %v366_v16 = vld [vmem:[#allocation2 + $0x8] sm:$0xff] }
 0x119   : > { %v375_v17 = vadd.f32 %v543_v12, %v366_v16  ;;  %385 = vst.msk [vmem:[%s270_s6] sm:$0xf] %vm384_vm2, %v552_v15 }
 0x11b   : > { %v553_v18 = vpack.c.bf16 %v375_v17, %v375_v17 }
 0x11d   : > { %386 = vst.msk [vmem:[%s270_s6 + $0x4] sm:$0xf] %vm384_vm2, %v553_v18 }
 0x11e   : > { %715 = shalt.err (!%p712_p5)
}
 0x11f   : > { %s716_s27 = scalar_lea.hbm %s964_s25, 128  ;;  %s720_s24 = scalar_lea.hbm %s1016_s3, 384 }
 0x120   : > { %p717_p7 = scmp.ne.s32.totalorder %s964_s25, %s716_s27  ;;  %p721_p11 = scmp.lt.s32.totalorder %s964_s25, %s1016_s3 }
 0x121   : > { %p722_p10 = scmp.lt.s32.totalorder %s720_s24, %s716_s27 }
 0x122   : > { %p718_p6 = pnand %p717_p7, %p1031_p8 }
 0x123   : > { %p723_p1 = por %p722_p10, %p721_p11 }
 0x124   : > { %p719_p9 = pneg %p718_p6 }
 0x126   : > { %p724_p4 = pnand %p723_p1, %p719_p9 }
 0x128   : > { %727 = shalt.err (!%p724_p4)
}
 0x129   : > { %s795_s5 = smov 64   ;;  %s796_s6 = smov 4  }
 0x12a   : > { %572 = dma.vmem_to_hbm [thread:$0]  (%p1031_p8), %s966_s21, 128, %s964_s25, %s388_s8, %s795_s5, %s795_s5, %s796_s6  }
 0x12b PF: > { %p589_p12 = scmp.ge.s32.totalorder %s786_s17, 2  ;;  %s419_s10 = sand.u32 1, %s766_s12  }
 0x12c   : > { %p1032_p13 = scmp.ne.s32.totalorder %s1023_s23, 0  ;;  %s420_s7 = scalar_lea.sflag [#allocation5], %s419_s10 }
 0x12e   : > { %p583_p0 = pnand %p589_p12, %p1032_p13 }
 0x130   : > { %p584_p2 = pneg %p583_p0 }
 0x132   : > { %761 = dma.done.wait (%p584_p2), %s420_s7, 128  }
 0x133   : > { %763 = vsyncadd (%p584_p2), %s420_s7, 4294967168  ;;  %s20_s17 = sadd.s32 1, %s786_s17   ;;  %s1033_s12 = smov %s770_s13 }
 0x134   : > { %p17_p3 = scmp.ge.s32.totalorder %s20_s17, 5   ;;  %s1034_s13 = smov %s774_s14 }
 0x135   : > { %s1035_s14 = smov %s915_s19  ;;  %s1036_s15 = smov %s782_s16 }
 0x136   : > { %s1037_s16 = smov %s1039_s28  ;;  %19 = sbr.rel (!%p17_p3) target bundleno = 7 (0x7), region = 94 }
 0x13b   :  { %425 = vsyncpa [#allocation4], 1 }
 0x13c   :  { %427 = vsyncpa [#allocation4 + $0x1], 1 }
 0x13d   :  { %428 = vsyncpa [#allocation7], 1 }
 0x13e   :  { %430 = vsyncpa [#allocation7 + $0x1], 1 }
 0x13f   :  { %431 = vsyncpa [#allocation5], 1 }
 0x140   :  { %433 = vsyncpa [#allocation5 + $0x1], 1 }

</bundles_post_ra>
